<compile_context>
chip_gen: v7x
topology: tpu7x:2x2x1
jax: 0.10.0
libtpu: 0.0.40
codegen_flags: <defaults>
</compile_context>

<pallas_src>
import numpy as np
import jax
import jax.numpy as jnp
from jax.experimental import pallas as pl
from jax.experimental.pallas import tpu as pltpu

# ----------------------------- hyperparameters -------------------------------
F = 4          # frequency bins (depthwise groups)
NCH = 4        # microphones / channels
NSOURCE = 2    # sources
W = 3          # conv kernel width (time)
H = 8          # hidden channels per frequency
L = 3          # conv layers (this script implements L == 3)
B = 2          # batch
T = 16         # time frames
USE_PAD = True
PAD = (W - 1) // 2 if USE_PAD else 0
M = NCH * NSOURCE                 # mask channels per frequency

TPP = 64                          # lanes reserved per batch (padded time slot)
LANES = B * TPP                   # 128 -> lane-dense vregs, unmasked stores
assert TPP >= T + 2 * PAD and LANES % 128 == 0

RX = 2 * F * NCH                  # 32  (real+imag) input rows
RH = 2 * F * H                    # 64  hidden rows
RM = 2 * F * M                    # 64  mask rows
RY = 2 * F * NSOURCE              # 16  output rows

SLAB_COLS = 64                    # common contraction width of the weight slab
assert RH == SLAB_COLS and RM == SLAB_COLS and RX <= SLAB_COLS

# weight-slab row offsets (all multiples of 8 -> aligned sublane slices)
O_W1 = 0
O_W2 = O_W1 + W * RH              # 192
O_W3 = O_W2 + W * RH              # 384
O_E = O_W3 + W * RM               # 576  beamform channel->(channel,source) expansion
O_R = O_E + RM                    # 640  beamform sum-over-channels reduction
SLAB_ROWS = O_R + RY              # 656
O_B1, O_B2, O_B3 = 0, RH, 2 * RH
BIAS_ROWS = 2 * RH + RM           # 192


# ------------------------------ Pallas kernel --------------------------------
def bss_kernel(x_ref, slab_ref, bias_ref, y_ref):
    f32 = jnp.float32
    x = x_ref[...]                                    # (SLAB_COLS, LANES)

    # valid-lane mask: within each batch's 64-lane slot keep lanes [PAD, PAD+T).
    # Every conv output is re-masked, so the conv-pad lanes and the lane-padding
    # stay exactly zero -- that invariant is what makes pltpu.roll's wrap-around
    # harmless (wrapped lanes only ever carry zeros / land on masked lanes).
    lane = jax.lax.broadcasted_iota(jnp.int32, (1, LANES), 1)
    valid = (lane >= PAD) & (lane < PAD + T)
    for b in range(1, B):
        lo = b * TPP + PAD
        valid = valid | ((lane >= lo) & (lane < lo + T))
    mask = jnp.where(valid, f32(1), f32(0))

    def conv(h, w_off, b_off, rout, relu):
        # One block-complex matmul covers all taps/channels/freqs/real-imag:
        #   u = [W0; W1; W2] @ h ; out[:, j] = u0[:, j-1] + u1[:, j] + u2[:, j+1] + b
        w = slab_ref[w_off:w_off + W * rout, :]       # (W*rout, SLAB_COLS)
        b = bias_ref[b_off:b_off + rout, :]           # (rout, 1) -> lane broadcast
        u = jnp.dot(w, h, preferred_element_type=f32)  # (W*rout, LANES)
        out = (pltpu.roll(u[0 * rout:1 * rout, :], 1, 1)              # u0[:, j-1]
               + u[1 * rout:2 * rout, :]                              # u1[:, j]
               + pltpu.roll(u[2 * rout:3 * rout, :], LANES - 1, 1)    # u2[:, j+1]
               + b)
        if relu:
            out = jnp.maximum(out, 0.0)
        return out * mask                             # keep zero-pad invariant

    h1 = conv(x, O_W1, O_B1, RH, relu=True)           # (RH, LANES)
    h2 = conv(h1, O_W2, O_B2, RH, relu=True)          # (RH, LANES)
    h3 = conv(h2, O_W3, O_B3, RM, relu=False)         # rows: ri*F*M + f*M + c*NS + s

    # ---- complex beamform: Y[f,s,t] = sum_c x[f,c,t] * h[f,c,s,t] ----
    e_mat = slab_ref[O_E:O_E + RM, :]                 # (RM, SLAB_COLS) 0/1 expansion
    r_mat = slab_ref[O_R:O_R + RY, :]                 # (RY, RM)        0/1 reduction
    xe = jnp.dot(e_mat, x, preferred_element_type=f32)  # x duplicated to (c,s) rows
    hm = RM // 2                                      # real rows [0:hm), imag [hm:)
    yr = xe[:hm, :] * h3[:hm, :] - xe[hm:, :] * h3[hm:, :]
    yi = xe[:hm, :] * h3[hm:, :] + xe[hm:, :] * h3[:hm, :]
    y = jnp.dot(r_mat, jnp.concatenate([yr, yi], axis=0),
                preferred_element_type=f32)           # (RY, LANES)
    y_ref[...] = y                                    # single aligned full store


# --------------------------- one-time parameter packing -----------------------
def pack_params(params):
    """Pack the 12 conv tensors into one (SLAB_ROWS, SLAB_COLS) weight slab and
    one (BIAS_ROWS, 1) bias column.  Run once per parameter set (hot path only
    touches the packed arrays)."""
    (w1r, w1i, b1r, b1i, w2r, w2i, b2r, b2i, w3r, w3i, b3r, b3i) = params

    def bdiag(w):                                     # (F, cout, cin) -> (F*cout, F*cin)
        eye = jnp.eye(F, dtype=w.dtype)
        return jnp.einsum('foc,fg->fogc', w, eye).reshape(
            F * w.shape[1], F * w.shape[2])

    def pack_layer(wr, wi, br, bi):
        taps = []
        for k in range(W):
            A, Bm = bdiag(wr[..., k]), bdiag(wi[..., k])
            top = jnp.concatenate([A, -Bm], axis=1)   # block-complex [[Wr,-Wi],
            bot = jnp.concatenate([Bm, A], axis=1)    #                [Wi, Wr]]
            taps.append(jnp.concatenate([top, bot], axis=0))
        w_tall = jnp.concatenate(taps, axis=0)        # (W*2*F*cout, 2*F*cin)
        b_col = jnp.concatenate([br.reshape(-1), bi.reshape(-1)])[:, None]
        return w_tall, b_col

    w1t, b1c = pack_layer(w1r, w1i, b1r, b1i)         # (192, 32), (64, 1)
    w2t, b2c = pack_layer(w2r, w2i, b2r, b2i)         # (192, 64), (64, 1)
    w3t, b3c = pack_layer(w3r, w3i, b3r, b3i)         # (192, 64), (64, 1)
    w1t = jnp.pad(w1t, ((0, 0), (0, SLAB_COLS - w1t.shape[1])))

    # 0/1 beamform matrices: expand channel rows to (channel, source) rows, and
    # reduce (sum) over channels back down to (source) rows, per freq & ri.
    e_mat = np.zeros((RM, SLAB_COLS), np.float32)
    r_mat = np.zeros((RY, RM), np.float32)
    for ri in range(2):
        for f in range(F):
            for c in range(NCH):
                for s in range(NSOURCE):
                    e_mat[ri * F * M + f * M + c * NSOURCE + s,
                          ri * F * NCH + f * NCH + c] = 1.0
                    r_mat[ri * F * NSOURCE + f * NSOURCE + s,
                          ri * F * M + f * M + c * NSOURCE + s] = 1.0

    slab = jnp.concatenate(
        [w1t, w2t, w3t, jnp.asarray(e_mat), jnp.asarray(r_mat)],
        axis=0).astype(jnp.float32)                   # (656, 64)
    bias = jnp.concatenate([b1c, b2c, b3c], axis=0).astype(jnp.float32)  # (192, 1)
    assert slab.shape == (SLAB_ROWS, SLAB_COLS) and bias.shape == (BIAS_ROWS, 1)
    return slab, bias


# ------------------------------- forward wrapper ------------------------------
@jax.jit
def forward_pallas(x, slab, bias):
    """x: (B, 2F, NCH, T) float32 (PyTorch layout) -> squeezed (B, 2F, NSOURCE, T)."""
    # input repack: rows = ri*F*NCH + f*NCH + c ; lanes = b*TPP + PAD + t (zeros elsewhere)
    xr, xi = jnp.split(x, 2, axis=1)                  # (B, F, NCH, T)
    xc = jnp.stack([xr, xi], axis=0)                  # (ri, B, F, NCH, T)
    xc = jnp.transpose(xc, (0, 2, 3, 1, 4))           # (ri, F, NCH, B, T)
    xc = jnp.pad(xc, ((0, 0),) * 4 + ((PAD, TPP - T - PAD),))
    xin = xc.reshape(RX, LANES)
    xin = jnp.pad(xin, ((0, SLAB_COLS - RX), (0, 0))).astype(jnp.float32)

    y = pl.pallas_call(
        bss_kernel,
        out_shape=jax.ShapeDtypeStruct((RY, LANES), jnp.float32),
        grid=(1,),
        in_specs=[
            pl.BlockSpec((SLAB_COLS, LANES), lambda i: (0, 0)),
            pl.BlockSpec((SLAB_ROWS, SLAB_COLS), lambda i: (0, 0)),
            pl.BlockSpec((BIAS_ROWS, 1), lambda i: (0, 0)),
        ],
        out_specs=pl.BlockSpec((RY, LANES), lambda i: (0, 0)),
    )(xin, slab, bias)

    # back to PyTorch layout: (B, 2F, NSOURCE, T), then squeeze
    y = y.reshape(2, F, NSOURCE, B, TPP)[..., PAD:PAD + T]
    y = jnp.transpose(y, (3, 0, 1, 2, 4)).reshape(B, 2 * F, NSOURCE, T)
    return jnp.squeeze(y)      # torch.squeeze removes all unit dims; none here


# -------------------------- pure-JAX reference (check) ------------------------
def forward_reference(x, params):
    (w1r, w1i, b1r, b1i, w2r, w2i, b2r, b2i, w3r, w3i, b3r, b3i) = params
    xr, xi = jnp.split(x, 2, axis=1)                  # (B, F, NCH, T)

    def dw_conv(ar, ai, wr, wi, br, bi):
        ar_p = jnp.pad(ar, ((0, 0), (0, 0), (0, 0), (PAD, PAD)))
        ai_p = jnp.pad(ai, ((0, 0), (0, 0), (0, 0), (PAD, PAD)))

        def lin(w, a_p):
            out = 0.0
            for k in range(W):
                out = out + jnp.einsum('foc,bfct->bfot', w[..., k], a_p[..., k:k + T])
            return out

        hr = lin(wr, ar_p) - lin(wi, ai_p) + br[None]
        hi = lin(wr, ai_p) + lin(wi, ar_p) + bi[None]
        return hr, hi

    h1r, h1i = dw_conv(xr, xi, w1r, w1i, b1r, b1i)
    h1r, h1i = jax.nn.relu(h1r), jax.nn.relu(h1i)
    h2r, h2i = dw_conv(h1r, h1i, w2r, w2i, b2r, b2i)
    h2r, h2i = jax.nn.relu(h2r), jax.nn.relu(h2i)
    h3r, h3i = dw_conv(h2r, h2i, w3r, w3i, b3r, b3i)

    hr = h3r.reshape(B, F, NCH, NSOURCE, T)
    hi = h3i.reshape(B, F, NCH, NSOURCE, T)
    xr_e = xr[:, :, :, None, :]
    xi_e = xi[:, :, :, None, :]
    yrr = (xr_e * hr).sum(2)
    yri = (xr_e * hi).sum(2)
    yir = (xi_e * hr).sum(2)
    yii = (xi_e * hi).sum(2)
    Yr = yrr - yii
    Yi = yri + yir
    return jnp.squeeze(jnp.concatenate([Yr, Yi], axis=1))


# --------------------------------- parameters ---------------------------------
def init_params(key):
    keys = jax.random.split(key, 12)

    def conv_w(k, cout, cin):
        fan_in = cin * W
        return (jax.random.normal(k, (F, cout, cin, W), jnp.float32)
                / np.sqrt(fan_in)).astype(jnp.float32)

    def conv_b(k, cout):
        return (0.1 * jax.random.normal(k, (F, cout, 1), jnp.float32)).astype(jnp.float32)

    w1r, w1i = conv_w(keys[0], H, NCH), conv_w(keys[1], H, NCH)
    b1r, b1i = conv_b(keys[2], H), conv_b(keys[3], H)
    w2r, w2i = conv_w(keys[4], H, H), conv_w(keys[5], H, H)
    b2r, b2i = conv_b(keys[6], H), conv_b(keys[7], H)
    w3r, w3i = conv_w(keys[8], M, H), conv_w(keys[9], M, H)
    b3r, b3i = conv_b(keys[10], M), conv_b(keys[11], M)
    return (w1r, w1i, b1r, b1i, w2r, w2i, b2r, b2i, w3r, w3i, b3r, b3i)


if __name__ == "__main__":
    key = jax.random.PRNGKey(0)
    x = jax.random.normal(key, (B, 2 * F, NCH, T), dtype=jnp.float32)
    params = init_params(jax.random.PRNGKey(42))

    slab, bias = pack_params(params)          # one-time host-side packing
    out = forward_pallas(x, slab, bias)
    out = jax.block_until_ready(out)

    ref = forward_reference(x, params)
    np.testing.assert_allclose(np.asarray(out), np.asarray(ref), rtol=2e-3, atol=2e-3)

    print("KERNEL_OK")
</pallas_src>

<mosaic_0001>
module attributes {stable_mosaic.version = 11 : i64} {
  func.func @bss_kernel(%arg0: i32, %arg1: memref<64x128xf32, #tpu.memory_space<vmem>>, %arg2: memref<656x64xf32, #tpu.memory_space<vmem>>, %arg3: memref<192x1xf32, #tpu.memory_space<vmem>>, %arg4: memref<16x128xf32, #tpu.memory_space<vmem>>) attributes {dimension_semantics = [#tpu.dimension_semantics<arbitrary>], iteration_bounds = array<i64: 1>, scalar_prefetch = 0 : i64, scratch_operands = 0 : i64, tpu.core_type = #tpu.core_type<tc>, window_params = [{pipeline_mode = #tpu.pipeline_mode<synchronous>, transform_indices = @transform_0, window_bounds = array<i64: 64, 128>}, {pipeline_mode = #tpu.pipeline_mode<synchronous>, transform_indices = @transform_1, window_bounds = array<i64: 656, 64>}, {pipeline_mode = #tpu.pipeline_mode<synchronous>, transform_indices = @transform_2, window_bounds = array<i64: 192, 1>}, {pipeline_mode = #tpu.pipeline_mode<synchronous>, transform_indices = @transform_3, window_bounds = array<i64: 16, 128>}]} {
    %c0 = arith.constant 0 : index
    %c0_0 = arith.constant 0 : index
    %0 = vector.load %arg1[%c0, %c0_0] : memref<64x128xf32, #tpu.memory_space<vmem>>, vector<64x128xf32>
    %1 = tpu.iota {dimensions = array<i32: 1>} : vector<1x128xi32>
    %c1_i32 = arith.constant 1 : i32
    %2 = vector.broadcast %c1_i32 : i32 to vector<1x128xi32>
    %3 = arith.cmpi sge, %1, %2 : vector<1x128xi32>
    %c17_i32 = arith.constant 17 : i32
    %4 = vector.broadcast %c17_i32 : i32 to vector<1x128xi32>
    %5 = arith.cmpi slt, %1, %4 : vector<1x128xi32>
    %6 = arith.andi %3, %5 : vector<1x128xi1>
    %c65_i32 = arith.constant 65 : i32
    %7 = vector.broadcast %c65_i32 : i32 to vector<1x128xi32>
    %8 = arith.cmpi sge, %1, %7 : vector<1x128xi32>
    %c81_i32 = arith.constant 81 : i32
    %9 = vector.broadcast %c81_i32 : i32 to vector<1x128xi32>
    %10 = arith.cmpi slt, %1, %9 : vector<1x128xi32>
    %11 = arith.andi %8, %10 : vector<1x128xi1>
    %12 = arith.ori %6, %11 : vector<1x128xi1>
    %cst = arith.constant 1.000000e+00 : f32
    %cst_1 = arith.constant 0.000000e+00 : f32
    %13 = vector.broadcast %cst : f32 to vector<1x128xf32>
    %14 = vector.broadcast %cst_1 : f32 to vector<1x128xf32>
    %15 = arith.select %12, %13, %14 : vector<1x128xi1>, vector<1x128xf32>
    %c0_2 = arith.constant 0 : index
    %c0_3 = arith.constant 0 : index
    %16 = vector.load %arg2[%c0_2, %c0_3] : memref<656x64xf32, #tpu.memory_space<vmem>>, vector<192x64xf32>
    %c0_4 = arith.constant 0 : index
    %c0_5 = arith.constant 0 : index
    %17 = vector.load %arg3[%c0_4, %c0_5] : memref<192x1xf32, #tpu.memory_space<vmem>>, vector<64x1xf32>
    %cst_6 = arith.constant dense<0.000000e+00> : vector<192x128xf32>
    %18 = tpu.matmul %16, %0, %cst_6 {dimension_numbers = #tpu.dot_dimension_numbers<[1], [0], [0], [1], [0, 0, 1, 1], [], []>} : vector<192x64xf32>, vector<64x128xf32>, vector<192x128xf32> -> vector<192x128xf32>
    %19 = vector.extract_strided_slice %18 {offsets = [0, 0], sizes = [64, 128], strides = [1, 1]} : vector<192x128xf32> to vector<64x128xf32>
    %c1_i32_7 = arith.constant 1 : i32
    %20 = tpu.dynamic_rotate %19 by %c1_i32_7 dim 1 : vector<64x128xf32>, i32 -> vector<64x128xf32>
    %21 = vector.extract_strided_slice %18 {offsets = [64, 0], sizes = [64, 128], strides = [1, 1]} : vector<192x128xf32> to vector<64x128xf32>
    %22 = arith.addf %20, %21 : vector<64x128xf32>
    %23 = vector.extract_strided_slice %18 {offsets = [128, 0], sizes = [64, 128], strides = [1, 1]} : vector<192x128xf32> to vector<64x128xf32>
    %c127_i32 = arith.constant 127 : i32
    %24 = tpu.dynamic_rotate %23 by %c127_i32 dim 1 : vector<64x128xf32>, i32 -> vector<64x128xf32>
    %25 = arith.addf %22, %24 : vector<64x128xf32>
    %26 = vector.broadcast %17 : vector<64x1xf32> to vector<64x128xf32>
    %27 = arith.addf %25, %26 : vector<64x128xf32>
    %cst_8 = arith.constant 0.000000e+00 : f32
    %28 = vector.broadcast %cst_8 : f32 to vector<64x128xf32>
    %29 = arith.maximumf %27, %28 : vector<64x128xf32>
    %30 = vector.broadcast %15 : vector<1x128xf32> to vector<64x128xf32>
    %31 = arith.mulf %29, %30 : vector<64x128xf32>
    %c192 = arith.constant 192 : index
    %c0_9 = arith.constant 0 : index
    %32 = vector.load %arg2[%c192, %c0_9] : memref<656x64xf32, #tpu.memory_space<vmem>>, vector<192x64xf32>
    %c64 = arith.constant 64 : index
    %c0_10 = arith.constant 0 : index
    %33 = vector.load %arg3[%c64, %c0_10] : memref<192x1xf32, #tpu.memory_space<vmem>>, vector<64x1xf32>
    %cst_11 = arith.constant dense<0.000000e+00> : vector<192x128xf32>
    %34 = tpu.matmul %32, %31, %cst_11 {dimension_numbers = #tpu.dot_dimension_numbers<[1], [0], [0], [1], [0, 0, 1, 1], [], []>} : vector<192x64xf32>, vector<64x128xf32>, vector<192x128xf32> -> vector<192x128xf32>
    %35 = vector.extract_strided_slice %34 {offsets = [0, 0], sizes = [64, 128], strides = [1, 1]} : vector<192x128xf32> to vector<64x128xf32>
    %c1_i32_12 = arith.constant 1 : i32
    %36 = tpu.dynamic_rotate %35 by %c1_i32_12 dim 1 : vector<64x128xf32>, i32 -> vector<64x128xf32>
    %37 = vector.extract_strided_slice %34 {offsets = [64, 0], sizes = [64, 128], strides = [1, 1]} : vector<192x128xf32> to vector<64x128xf32>
    %38 = arith.addf %36, %37 : vector<64x128xf32>
    %39 = vector.extract_strided_slice %34 {offsets = [128, 0], sizes = [64, 128], strides = [1, 1]} : vector<192x128xf32> to vector<64x128xf32>
    %c127_i32_13 = arith.constant 127 : i32
    %40 = tpu.dynamic_rotate %39 by %c127_i32_13 dim 1 : vector<64x128xf32>, i32 -> vector<64x128xf32>
    %41 = arith.addf %38, %40 : vector<64x128xf32>
    %42 = vector.broadcast %33 : vector<64x1xf32> to vector<64x128xf32>
    %43 = arith.addf %41, %42 : vector<64x128xf32>
    %cst_14 = arith.constant 0.000000e+00 : f32
    %44 = vector.broadcast %cst_14 : f32 to vector<64x128xf32>
    %45 = arith.maximumf %43, %44 : vector<64x128xf32>
    %46 = vector.broadcast %15 : vector<1x128xf32> to vector<64x128xf32>
    %47 = arith.mulf %45, %46 : vector<64x128xf32>
    %c384 = arith.constant 384 : index
    %c0_15 = arith.constant 0 : index
    %48 = vector.load %arg2[%c384, %c0_15] : memref<656x64xf32, #tpu.memory_space<vmem>>, vector<192x64xf32>
    %c128 = arith.constant 128 : index
    %c0_16 = arith.constant 0 : index
    %49 = vector.load %arg3[%c128, %c0_16] : memref<192x1xf32, #tpu.memory_space<vmem>>, vector<64x1xf32>
    %cst_17 = arith.constant dense<0.000000e+00> : vector<192x128xf32>
    %50 = tpu.matmul %48, %47, %cst_17 {dimension_numbers = #tpu.dot_dimension_numbers<[1], [0], [0], [1], [0, 0, 1, 1], [], []>} : vector<192x64xf32>, vector<64x128xf32>, vector<192x128xf32> -> vector<192x128xf32>
    %51 = vector.extract_strided_slice %50 {offsets = [0, 0], sizes = [64, 128], strides = [1, 1]} : vector<192x128xf32> to vector<64x128xf32>
    %c1_i32_18 = arith.constant 1 : i32
    %52 = tpu.dynamic_rotate %51 by %c1_i32_18 dim 1 : vector<64x128xf32>, i32 -> vector<64x128xf32>
    %53 = vector.extract_strided_slice %50 {offsets = [64, 0], sizes = [64, 128], strides = [1, 1]} : vector<192x128xf32> to vector<64x128xf32>
    %54 = arith.addf %52, %53 : vector<64x128xf32>
    %55 = vector.extract_strided_slice %50 {offsets = [128, 0], sizes = [64, 128], strides = [1, 1]} : vector<192x128xf32> to vector<64x128xf32>
    %c127_i32_19 = arith.constant 127 : i32
    %56 = tpu.dynamic_rotate %55 by %c127_i32_19 dim 1 : vector<64x128xf32>, i32 -> vector<64x128xf32>
    %57 = arith.addf %54, %56 : vector<64x128xf32>
    %58 = vector.broadcast %49 : vector<64x1xf32> to vector<64x128xf32>
    %59 = arith.addf %57, %58 : vector<64x128xf32>
    %60 = vector.broadcast %15 : vector<1x128xf32> to vector<64x128xf32>
    %61 = arith.mulf %59, %60 : vector<64x128xf32>
    %c576 = arith.constant 576 : index
    %c0_20 = arith.constant 0 : index
    %62 = vector.load %arg2[%c576, %c0_20] : memref<656x64xf32, #tpu.memory_space<vmem>>, vector<64x64xf32>
    %c640 = arith.constant 640 : index
    %c0_21 = arith.constant 0 : index
    %63 = vector.load %arg2[%c640, %c0_21] : memref<656x64xf32, #tpu.memory_space<vmem>>, vector<16x64xf32>
    %cst_22 = arith.constant dense<0.000000e+00> : vector<64x128xf32>
    %64 = tpu.matmul %62, %0, %cst_22 {dimension_numbers = #tpu.dot_dimension_numbers<[1], [0], [0], [1], [0, 0, 1, 1], [], []>} : vector<64x64xf32>, vector<64x128xf32>, vector<64x128xf32> -> vector<64x128xf32>
    %65 = vector.extract_strided_slice %64 {offsets = [0, 0], sizes = [32, 128], strides = [1, 1]} : vector<64x128xf32> to vector<32x128xf32>
    %66 = vector.extract_strided_slice %61 {offsets = [0, 0], sizes = [32, 128], strides = [1, 1]} : vector<64x128xf32> to vector<32x128xf32>
    %67 = arith.mulf %65, %66 : vector<32x128xf32>
    %68 = vector.extract_strided_slice %64 {offsets = [32, 0], sizes = [32, 128], strides = [1, 1]} : vector<64x128xf32> to vector<32x128xf32>
    %69 = vector.extract_strided_slice %61 {offsets = [32, 0], sizes = [32, 128], strides = [1, 1]} : vector<64x128xf32> to vector<32x128xf32>
    %70 = arith.mulf %68, %69 : vector<32x128xf32>
    %71 = arith.subf %67, %70 : vector<32x128xf32>
    %72 = vector.extract_strided_slice %64 {offsets = [0, 0], sizes = [32, 128], strides = [1, 1]} : vector<64x128xf32> to vector<32x128xf32>
    %73 = vector.extract_strided_slice %61 {offsets = [32, 0], sizes = [32, 128], strides = [1, 1]} : vector<64x128xf32> to vector<32x128xf32>
    %74 = arith.mulf %72, %73 : vector<32x128xf32>
    %75 = vector.extract_strided_slice %64 {offsets = [32, 0], sizes = [32, 128], strides = [1, 1]} : vector<64x128xf32> to vector<32x128xf32>
    %76 = vector.extract_strided_slice %61 {offsets = [0, 0], sizes = [32, 128], strides = [1, 1]} : vector<64x128xf32> to vector<32x128xf32>
    %77 = arith.mulf %75, %76 : vector<32x128xf32>
    %78 = arith.addf %74, %77 : vector<32x128xf32>
    %79 = tpu.concatenate %71, %78 in 0 : vector<32x128xf32>, vector<32x128xf32> -> vector<64x128xf32>
    %cst_23 = arith.constant dense<0.000000e+00> : vector<16x128xf32>
    %80 = tpu.matmul %63, %79, %cst_23 {dimension_numbers = #tpu.dot_dimension_numbers<[1], [0], [0], [1], [0, 0, 1, 1], [], []>} : vector<16x64xf32>, vector<64x128xf32>, vector<16x128xf32> -> vector<16x128xf32>
    %c0_24 = arith.constant 0 : index
    %c0_25 = arith.constant 0 : index
    %81 = vector.load %arg4[%c0_24, %c0_25] : memref<16x128xf32, #tpu.memory_space<vmem>>, vector<16x128xf32>
    tpu.vector_store %arg4[%c0_24, %c0_25], %80 {strides = array<i32>} : memref<16x128xf32, #tpu.memory_space<vmem>>, vector<16x128xf32>,
    return
  }
  func.func @transform_0(%arg0: i32) -> (i32, i32) {
    %c0_i32 = arith.constant 0 : i32
    %c0_i32_0 = arith.constant 0 : i32
    %c0_i32_1 = arith.constant 0 : i32
    return %c0_i32, %c0_i32_0 : i32, i32
  }
  func.func @transform_1(%arg0: i32) -> (i32, i32) {
    %c0_i32 = arith.constant 0 : i32
    %c0_i32_0 = arith.constant 0 : i32
    %c0_i32_1 = arith.constant 0 : i32
    return %c0_i32, %c0_i32_0 : i32, i32
  }
  func.func @transform_2(%arg0: i32) -> (i32, i32) {
    %c0_i32 = arith.constant 0 : i32
    %c0_i32_0 = arith.constant 0 : i32
    %c0_i32_1 = arith.constant 0 : i32
    return %c0_i32, %c0_i32_0 : i32, i32
  }
  func.func @transform_3(%arg0: i32) -> (i32, i32) {
    %c0_i32 = arith.constant 0 : i32
    %c0_i32_0 = arith.constant 0 : i32
    %c0_i32_1 = arith.constant 0 : i32
    return %c0_i32, %c0_i32_0 : i32, i32
  }
}

</mosaic_0001>

<bundles_post_ra>
// kernel: forward_pallas.1
= control target key start
LH: loop header
LB: loop body
LE: loop exit
PB: predicated region body
PF: predicated region fallthrough
CT: control target
= control target key end

     0   :  { %vm64_vm0 = vcmask 523264   ;;  %v1971_v3 = vmov 0   ;;  %s1972_s8 = smov 1   ;;  %s1973_s9 = smov 127   ;;  %s2615_s0 = inlined_call_operand.vmem [shape: f32[64,128], index: 0, kind: input, shape index: {}]   ;;  %s2616_s1 = inlined_call_operand.vmem [shape: f32[656,64], index: 1, kind: input, shape index: {}]   ;;  %s2617_s2 = inlined_call_operand.vmem [shape: f32[192,1], index: 2, kind: input, shape index: {}]   ;;  %s2618_s3 = inlined_call_operand.vmem [shape: f32[16,128], index: 3, kind: output, shape index: {}]  }
   0x1   :  { %v14_v0 = vld [vmem:[%s2615_s0] sm:$0xff]  ;;  %v15_v1 = vld [vmem:[%s2615_s0 + $0x8] sm:$0xff]  ;;  %v16_v2 = vld [vmem:[%s2615_s0 + $0x10] sm:$0xff]  ;;  %1969 = vset.pattern.permute.xlu0 %v1971_v3  ;;  %1970 = vset.pattern.permute.xlu1 %v1971_v3 }
   0x2   :  { %v2004_v4 = vpack.c.bf16 %v15_v1, %v14_v0  ;;  %v17_v5 = vld [vmem:[%s2615_s0 + $0x18] sm:$0xff]  ;;  %v18_v7 = vld [vmem:[%s2615_s0 + $0x20] sm:$0xff]  ;;  %v19_v8 = vld [vmem:[%s2615_s0 + $0x28] sm:$0xff] }
   0x3   :  { %v2009_v6 = vpack.c.bf16 %v17_v5, %v16_v2  ;;  %v32_v9 = vld [vmem:[%s2616_s1] sm:$0xff]  ;;  %v2024_v10 = vpack.c.bf16 %v19_v8, %v18_v7  ;;  %v20_v11 = vld [vmem:[%s2615_s0 + $0x30] sm:$0xff]  ;;  %v21_v12 = vld [vmem:[%s2615_s0 + $0x38] sm:$0xff] }
   0x4   :  { %1886 = vmatprep.subr.bf16.mxu0 %v2004_v4  ;;  %1698 = vmatprep.mubr.msk.f32.mxu0 %vm64_vm0, %v32_v9  ;;  %v2034_v13 = vpack.c.bf16 %v21_v12, %v20_v11  ;;  %v56_v14 = vld [vmem:[%s2617_s2] sm:$0xff]  ;;  %v59_v15 = vld [vmem:[%s2617_s2 + $0x18] sm:$0xff]  ;;  %v57_v16 = vld [vmem:[%s2617_s2 + $0x8] sm:$0xff] }
   0x5   :  { %1888 = vmatpush3.bf16.msra.mxu0 %v2004_v4  ;;  %372 = vperm.xlu0 %1969, %v56_v14   ;;  %v61_v17 = vld [vmem:[%s2617_s2 + $0x28] sm:$0xff]  ;;  %v58_v19 = vld [vmem:[%s2617_s2 + $0x10] sm:$0xff]  ;;  %v63_v21 = vld [vmem:[%s2617_s2 + $0x38] sm:$0xff] }
   0x6   :  { %1890 = vmatprep.subr.bf16.mxu0 %v2009_v6  ;;  %387 = vperm.xlu1 %1970, %v59_v15   ;;  %v33_v18 = vld [vmem:[%s2616_s1 + $0x8] sm:$0xff]  ;;  %v34_v20 = vld [vmem:[%s2616_s1 + $0x10] sm:$0xff]  ;;  %v35_v22 = vld [vmem:[%s2616_s1 + $0x18] sm:$0xff] }
   0x7   :  { %v60_v23 = vld [vmem:[%s2617_s2 + $0x20] sm:$0xff]  ;;  %v37_v25 = vld [vmem:[%s2616_s1 + $0x28] sm:$0xff]  ;;  %v62_v26 = vld [vmem:[%s2617_s2 + $0x30] sm:$0xff] }
   0x8   :  { %v36_v24 = vld [vmem:[%s2616_s1 + $0x20] sm:$0xff]  ;;  %v38_v27 = vld [vmem:[%s2616_s1 + $0x30] sm:$0xff]  ;;  %v39_v28 = vld [vmem:[%s2616_s1 + $0x38] sm:$0xff] }
   0x9   :  { %1892 = vmatpush3.bf16.msra.mxu0 %v2009_v6  ;;  %377 = vperm.xlu0 %1969, %v57_v16   ;;  %v40_v29 = vld [vmem:[%s2616_s1 + $0x40] sm:$0xff]  ;;  %v41_v30 = vld [vmem:[%s2616_s1 + $0x48] sm:$0xff]  ;;  %v42_v31 = vld [vmem:[%s2616_s1 + $0x50] sm:$0xff] }
   0xa   :  { %1894 = vmatprep.subr.bf16.mxu0 %v2024_v10  ;;  %397 = vperm.xlu1 %1970, %v61_v17   ;;  %v43_v32 = vld [vmem:[%s2616_s1 + $0x58] sm:$0xff]  ;;  %v44_v33 = vld [vmem:[%s2616_s1 + $0x60] sm:$0xff]  ;;  %v45_v34 = vld [vmem:[%s2616_s1 + $0x68] sm:$0xff] }
   0xb   :  { %v46_v35 = vld [vmem:[%s2616_s1 + $0x70] sm:$0xff]  ;;  %v47_v36 = vld [vmem:[%s2616_s1 + $0x78] sm:$0xff]  ;;  %v48_v37 = vld [vmem:[%s2616_s1 + $0x80] sm:$0xff] }
   0xc   :  { %v49_v38 = vld [vmem:[%s2616_s1 + $0x88] sm:$0xff]  ;;  %v50_v39 = vld [vmem:[%s2616_s1 + $0x90] sm:$0xff]  ;;  %v51_v40 = vld [vmem:[%s2616_s1 + $0x98] sm:$0xff] }
   0xd   :  { %1896 = vmatpush3.bf16.msra.mxu0 %v2024_v10  ;;  %382 = vperm.xlu0 %1969, %v58_v19   ;;  %v52_v41 = vld [vmem:[%s2616_s1 + $0xa0] sm:$0xff]  ;;  %v53_v42 = vld [vmem:[%s2616_s1 + $0xa8] sm:$0xff]  ;;  %v54_v43 = vld [vmem:[%s2616_s1 + $0xb0] sm:$0xff] }
   0xe   :  { %1898 = vmatprep.subr.bf16.mxu0 %v2034_v13  ;;  %407 = vperm.xlu1 %1970, %v63_v21   ;;  %v55_v44 = vld [vmem:[%s2616_s1 + $0xb8] sm:$0xff]  ;;  %v434_v5 = vld [vmem:[%s2616_s1 + $0xc0] sm:$0xff]  ;;  %v459_v8 = vld [vmem:[%s2617_s2 + $0x48] sm:$0xff] }
   0xf   :  { %1750 = vmatprep.mubr.msk.f32.mxu1 %vm64_vm0, %v434_v5  ;;  %v458_v9 = vld [vmem:[%s2617_s2 + $0x40] sm:$0xff]  ;;  %v461_v11 = vld [vmem:[%s2617_s2 + $0x58] sm:$0xff]  ;;  %v460_v12 = vld [vmem:[%s2617_s2 + $0x50] sm:$0xff] }
  0x10   :  { %v463_v14 = vld [vmem:[%s2617_s2 + $0x68] sm:$0xff]  ;;  %v462_v15 = vld [vmem:[%s2617_s2 + $0x60] sm:$0xff]  ;;  %v465_v16 = vld [vmem:[%s2617_s2 + $0x78] sm:$0xff] }
  0x11   :  { %1900 = vmatpush3.bf16.msra.mxu0 %v2034_v13  ;;  %392 = vperm.xlu0 %1969, %v60_v23   ;;  %v464_v17 = vld [vmem:[%s2617_s2 + $0x70] sm:$0xff] }
  0x14   :  { %1699 = vmatmul.mubr.msk.f32.vlgmr.msra.gmra.mrb[0].mxu0 %vm64_vm0, %v33_v18 }
  0x15   :  { %1701 = vmatprep.mubr.msk.f32.mxu0 %vm64_vm0, %v34_v20  ;;  %402 = vperm.xlu0 %1969, %v62_v26  }
  0x18   :  { %1702 = vmatmul.mubr.msk.f32.gmra.mrb[2].mxu0 %vm64_vm0, %v35_v22 }
  0x19   :  { %1704 = vmatprep.mubr.msk.f32.mxu0 %vm64_vm0, %v36_v24 }
  0x1c   :  { %1705 = vmatmul.mubr.msk.f32.gmra.mrb[4].mxu0 %vm64_vm0, %v37_v25 }
  0x1d   :  { %1707 = vmatprep.mubr.msk.f32.mxu0 %vm64_vm0, %v38_v27 }
  0x20   :  { %1708 = vmatmul.mubr.msk.f32.gmra.mrb[6].mxu0 %vm64_vm0, %v39_v28 }
  0x21   :  { %1710 = vmatprep.mubr.msk.f32.mxu0 %vm64_vm0, %v40_v29 }
  0x24   :  { %1711 = vmatmul.mubr.msk.f32.gmra.mrb[8].mxu0 %vm64_vm0, %v41_v30  ;;  %v22_v30 = vlaneseq }
  0x25   :  { %1713 = vmatprep.mubr.msk.f32.mxu0 %vm64_vm0, %v42_v31 }
  0x28   :  { %1714 = vmatmul.mubr.msk.f32.gmra.mrb[10].mxu0 %vm64_vm0, %v43_v32  ;;  %v23_v32 = vand.u32 127, %v22_v30 }
  0x29   :  { %1716 = vmatprep.mubr.msk.f32.mxu0 %vm64_vm0, %v44_v33 }
  0x2a   :  { %vm24_vm1 = vcmp.ge.s32.totalorder %v23_v32, 1  ;;  %vm25_vm2 = vcmp.lt.s32.totalorder %v23_v32, 17  ;;  %vm27_vm3 = vcmp.ge.s32.totalorder %v23_v32, 65  ;;  %vm28_vm4 = vcmp.lt.s32.totalorder %v23_v32, 81  ;;  %v437_v32 = vld [vmem:[%s2616_s1 + $0xd8] sm:$0xff] }
  0x2b   :  { %vm26_vm5 = vmand %vm24_vm1, %vm25_vm2 }
  0x2c   :  { %1717 = vmatmul.mubr.msk.f32.gmra.mrb[12].mxu0 %vm64_vm0, %v45_v34  ;;  %vm29_vm6 = vmand %vm27_vm3, %vm28_vm4 }
  0x2d   :  { %1719 = vmatprep.mubr.msk.f32.mxu0 %vm64_vm0, %v46_v35  ;;  %vm30_vm7 = vmor %vm26_vm5, %vm29_vm6 }
  0x30   :  { %1720 = vmatmul.mubr.msk.f32.gmra.mrb[14].mxu0 %vm64_vm0, %v47_v36 }
  0x31   :  { %1722 = vmatprep.mubr.msk.f32.mxu0 %vm64_vm0, %v48_v37 }
  0x34   :  { %1723 = vmatmul.mubr.msk.f32.gmra.mrb[16].mxu0 %vm64_vm0, %v49_v38 }
  0x35   :  { %1725 = vmatprep.mubr.msk.f32.mxu0 %vm64_vm0, %v50_v39 }
  0x38   :  { %1726 = vmatmul.mubr.msk.f32.gmra.mrb[18].mxu0 %vm64_vm0, %v51_v40 }
  0x39   :  { %1728 = vmatprep.mubr.msk.f32.mxu0 %vm64_vm0, %v52_v41 }
  0x3c   :  { %1729 = vmatmul.mubr.msk.f32.gmra.mrb[20].mxu0 %vm64_vm0, %v53_v42 }
  0x3d   :  { %1731 = vmatprep.mubr.msk.f32.mxu0 %vm64_vm0, %v54_v43 }
  0x40   :  { %1732 = vmatmul.mubr.msk.f32.gmra.mrb[22].mxu0 %vm64_vm0, %v55_v44 }
  0x84   :  { %v373_v19 = vpop.permute.xlu0 %372 }
  0x85   :  { %v388_v18 = vpop.permute.xlu1 %387 }
  0x88   :  { %v378_v21 = vpop.permute.xlu0 %377 }
  0x89   :  { %v398_v20 = vpop.permute.xlu1 %397 }
  0x8c   :  { %v383_v23 = vpop.permute.xlu0 %382 }
  0x8d   :  { %v2215_v22 = vpop.permute.xlu1 %407 }
  0x90   :  { %v393_v25 = vpop.permute.xlu0 %392 }
  0x94   :  { %v2217_v27 = vpop.permute.xlu0 %402 }
  0xe7   :  { %v1700_v45 = vpop.f32.mrb[0].mxu0 }
  0xe8   :  { %324 = vrot.lane.b32.xlu1 %v1700_v45, %s1972_s8  ;;  %v203_v46 = vpop.f32.mrb[1].mxu0 }
  0xeb   :  { %v1703_v47 = vpop.f32.mrb[2].mxu0 }
  0xec   :  { %322 = vrot.lane.b32.xlu1 %v203_v46, %s1972_s8  ;;  %v213_v48 = vpop.f32.mrb[3].mxu0  ;;  %v1974_v46 = vmov 0.0  }
  0xed   :  { %326 = vrot.lane.b32.xlu0 %v213_v48, %s1972_s8 }
  0xef   :  { %v1706_v49 = vpop.f32.mrb[4].mxu0 }
  0xf0   :  { %328 = vrot.lane.b32.xlu1 %v1703_v47, %s1972_s8  ;;  %v223_v50 = vpop.f32.mrb[5].mxu0  ;;  %v2223_v47 = vsel %vm30_vm7, 1.0, %v1974_v46  ;;  %v455_v46 = vld [vmem:[%s2616_s1 + $0x168] sm:$0xff] }
  0xf1   :  { %330 = vrot.lane.b32.xlu0 %v223_v50, %s1972_s8 }
  0xf3   :  { %v1709_v51 = vpop.f32.mrb[6].mxu0 }
  0xf4   :  { %332 = vrot.lane.b32.xlu1 %v1706_v49, %s1972_s8  ;;  %v233_v52 = vpop.f32.mrb[7].mxu0 }
  0xf5   :  { %334 = vrot.lane.b32.xlu0 %v233_v52, %s1972_s8 }
  0xf7   :  { %v2162_v53 = vpop.f32.mrb[8].mxu0 }
  0xf8   :  { %336 = vrot.lane.b32.xlu1 %v1709_v51, %s1972_s8  ;;  %v2165_v54 = vpop.f32.mrb[9].mxu0 }
  0xfb   :  { %v2167_v55 = vpop.f32.mrb[10].mxu0 }
  0xfc   :  { %v2169_v56 = vpop.f32.mrb[11].mxu0 }
  0xff   :  { %v2171_v57 = vpop.f32.mrb[12].mxu0 }
 0x100   :  { %v2173_v58 = vpop.f32.mrb[13].mxu0 }
 0x103   :  { %v2175_v59 = vpop.f32.mrb[14].mxu0 }
 0x104   :  { %v2177_v60 = vpop.f32.mrb[15].mxu0 }
 0x107   :  { %v1724_v61 = vpop.f32.mrb[16].mxu0 }
 0x108   :  { %348 = vrot.lane.b32.xlu1 %v1724_v61, %s1973_s9  ;;  %v283_v62 = vpop.f32.mrb[17].mxu0 }
 0x109   :  { %346 = vrot.lane.b32.xlu0 %v283_v62, %s1973_s9 }
 0x10b   :  { %v1727_v63 = vpop.f32.mrb[18].mxu0 }
 0x10c   :  { %352 = vrot.lane.b32.xlu1 %v1727_v63, %s1973_s9  ;;  %v293_v0 = vpop.f32.mrb[19].mxu0 }
 0x10d   :  { %350 = vrot.lane.b32.xlu0 %v293_v0, %s1973_s9 }
 0x10f   :  { %v1730_v1 = vpop.f32.mrb[20].mxu0 }
 0x110   :  { %356 = vrot.lane.b32.xlu1 %v1730_v1, %s1973_s9  ;;  %v303_v2 = vpop.f32.mrb[21].mxu0 }
 0x111   :  { %354 = vrot.lane.b32.xlu0 %v303_v2, %s1973_s9 }
 0x113   :  { %v1733_v3 = vpop.f32.mrb[22].mxu0 }
 0x114   :  { %360 = vrot.lane.b32.xlu1 %v1733_v3, %s1973_s9  ;;  %v313_v7 = vpop.f32.mrb[23].mxu0 }
 0x115   :  { %358 = vrot.lane.b32.xlu0 %v313_v7, %s1973_s9 }
 0x118   :  { %778 = vperm.xlu1 %1970, %v459_v8  }
 0x119   :  { %773 = vperm.xlu0 %1969, %v458_v9  }
 0x11c   :  { %788 = vperm.xlu1 %1970, %v461_v11  }
 0x11d   :  { %783 = vperm.xlu0 %1969, %v460_v12  }
 0x120   :  { %798 = vperm.xlu1 %1970, %v463_v14  }
 0x121   :  { %793 = vperm.xlu0 %1969, %v462_v15  }
 0x124   :  { %808 = vperm.xlu1 %1970, %v465_v16  }
 0x125   :  { %803 = vperm.xlu0 %1969, %v464_v17  }
 0x15a   :  { %v325_v24 = vpop.permute.xlu1 %324 }
 0x15b   :  { %v339_v36 = vadd.f32 %v2162_v53, %v325_v24 }
 0x15e   :  { %v323_v26 = vpop.permute.xlu1 %322 }
 0x15f   :  { %v327_v29 = vpop.permute.xlu0 %326  ;;  %v338_v37 = vadd.f32 %v323_v26, %v2165_v54 }
 0x160   :  { %v340_v44 = vadd.f32 %v327_v29, %v2169_v56 }
 0x162   :  { %v329_v28 = vpop.permute.xlu1 %328 }
 0x163   :  { %v331_v33 = vpop.permute.xlu0 %330  ;;  %v341_v42 = vadd.f32 %v2167_v55, %v329_v28 }
 0x164   :  { %v342_v55 = vadd.f32 %v331_v33, %v2173_v58  ;;  %v438_v33 = vld [vmem:[%s2616_s1 + $0xe0] sm:$0xff] }
 0x166   :  { %v333_v31 = vpop.permute.xlu1 %332 }
 0x167   :  { %v335_v35 = vpop.permute.xlu0 %334  ;;  %v343_v54 = vadd.f32 %v2171_v57, %v333_v31 }
 0x168   :  { %v344_v12 = vadd.f32 %v335_v35, %v2177_v60  ;;  %v441_v35 = vld [vmem:[%s2616_s1 + $0xf8] sm:$0xff] }
 0x16a   :  { %v337_v34 = vpop.permute.xlu1 %336 }
 0x16b   :  { %v345_v9 = vadd.f32 %v2175_v59, %v337_v34  ;;  %v439_v34 = vld [vmem:[%s2616_s1 + $0xe8] sm:$0xff] }
 0x17a   :  { %v349_v38 = vpop.permute.xlu1 %348 }
 0x17b   :  { %v363_v39 = vadd.f32 %v349_v38, %v339_v36  ;;  %v347_v40 = vpop.permute.xlu0 %346  ;;  %v443_v36 = vld [vmem:[%s2616_s1 + $0x108] sm:$0xff]  ;;  %v446_v38 = vld [vmem:[%s2616_s1 + $0x120] sm:$0xff] }
 0x17c   :  { %v362_v41 = vadd.f32 %v347_v40, %v338_v37  ;;  %v445_v37 = vld [vmem:[%s2616_s1 + $0x118] sm:$0xff] }
 0x17d   :  { %v411_v43 = vadd.f32 %v378_v21, %v363_v39  ;;  %v448_v39 = vld [vmem:[%s2616_s1 + $0x130] sm:$0xff]  ;;  %v449_v40 = vld [vmem:[%s2616_s1 + $0x138] sm:$0xff] }
 0x17e   :  { %v410_v45 = vadd.f32 %v373_v19, %v362_v41  ;;  %v353_v48 = vpop.permute.xlu1 %352  ;;  %v450_v41 = vld [vmem:[%s2616_s1 + $0x140] sm:$0xff] }
 0x17f   :  { %v419_v49 = vmax.f32 %v411_v43, 0.0  ;;  %v365_v50 = vadd.f32 %v353_v48, %v341_v42  ;;  %v351_v51 = vpop.permute.xlu0 %350  ;;  %v451_v42 = vld [vmem:[%s2616_s1 + $0x148] sm:$0xff]  ;;  %v452_v43 = vld [vmem:[%s2616_s1 + $0x150] sm:$0xff] }
 0x180   :  { %v418_v52 = vmax.f32 %v410_v45, 0.0  ;;  %v364_v53 = vadd.f32 %v351_v51, %v340_v44  ;;  %v453_v44 = vld [vmem:[%s2616_s1 + $0x158] sm:$0xff]  ;;  %v454_v45 = vld [vmem:[%s2616_s1 + $0x160] sm:$0xff]  ;;  %v456_v48 = vld [vmem:[%s2616_s1 + $0x170] sm:$0xff] }
 0x181   :  { %v413_v61 = vadd.f32 %v388_v18, %v365_v50  ;;  %v427_v62 = vmul.f32 %v419_v49, %v2223_v47  ;;  %v457_v49 = vld [vmem:[%s2616_s1 + $0x178] sm:$0xff] }
 0x182   :  { %v412_v63 = vadd.f32 %v383_v23, %v364_v53  ;;  %v357_v0 = vpop.permute.xlu1 %356  ;;  %v426_v56 = vmul.f32 %v418_v52, %v2223_v47 }
 0x183   :  { %v421_v1 = vmax.f32 %v413_v61, 0.0  ;;  %v367_v2 = vadd.f32 %v357_v0, %v343_v54  ;;  %v355_v3 = vpop.permute.xlu0 %354 }
 0x184   :  { %v420_v5 = vmax.f32 %v412_v63, 0.0  ;;  %v366_v7 = vadd.f32 %v355_v3, %v342_v55  ;;  %v1901_v8 = vpack.c.bf16 %v427_v62, %v426_v56 }
 0x185   :  { %v429_v11 = vmul.f32 %v421_v1, %v2223_v47  ;;  %v415_v57 = vadd.f32 %v398_v20, %v367_v2 }
 0x186   :  { %v428_v14 = vmul.f32 %v420_v5, %v2223_v47  ;;  %v414_v58 = vadd.f32 %v393_v25, %v366_v7  ;;  %1902 = vmatprep.subr.bf16.mxu1 %v1901_v8  ;;  %v361_v15 = vpop.permute.xlu1 %360 }
 0x187   :  { %v423_v16 = vmax.f32 %v415_v57, 0.0  ;;  %v369_v17 = vadd.f32 %v361_v15, %v345_v9  ;;  %1904 = vmatpush3.bf16.msra.mxu1 %v1901_v8  ;;  %v359_v18 = vpop.permute.xlu0 %358  ;;  %v835_v15 = vld [vmem:[%s2616_s1 + $0x180] sm:$0xff] }
 0x188   :  { %v422_v19 = vmax.f32 %v414_v58, 0.0  ;;  %v368_v21 = vadd.f32 %v359_v18, %v344_v12  ;;  %v1905_v23 = vpack.c.bf16 %v429_v11, %v428_v14  ;;  %1802 = vmatprep.mubr.msk.f32.mxu0 %vm64_vm0, %v835_v15  ;;  %v859_v18 = vld [vmem:[%s2617_s2 + $0x80] sm:$0xff] }
 0x189   :  { %v431_v24 = vmul.f32 %v423_v16, %v2223_v47  ;;  %v417_v59 = vadd.f32 %v2215_v22, %v369_v17  ;;  %v435_v22 = vld [vmem:[%s2616_s1 + $0xc8] sm:$0xff] }
 0x18a   :  { %v430_v20 = vmul.f32 %v422_v19, %v2223_v47  ;;  %v416_v60 = vadd.f32 %v2217_v27, %v368_v21  ;;  %1906 = vmatprep.subr.bf16.mxu1 %v1905_v23  ;;  %v436_v27 = vld [vmem:[%s2616_s1 + $0xd0] sm:$0xff]  ;;  %v860_v17 = vld [vmem:[%s2617_s2 + $0x88] sm:$0xff]  ;;  %v863_v21 = vld [vmem:[%s2617_s2 + $0xa0] sm:$0xff] }
 0x18b   :  { %v425_v26 = vmax.f32 %v417_v59, 0.0  ;;  %1908 = vmatpush3.bf16.msra.mxu1 %v1905_v23  ;;  %v864_v19 = vld [vmem:[%s2617_s2 + $0xa8] sm:$0xff]  ;;  %v862_v23 = vld [vmem:[%s2617_s2 + $0x98] sm:$0xff] }
 0x18c   :  { %v424_v25 = vmax.f32 %v416_v60, 0.0  ;;  %v1909_v28 = vpack.c.bf16 %v431_v24, %v430_v20  ;;  %v861_v24 = vld [vmem:[%s2617_s2 + $0x90] sm:$0xff]  ;;  %v866_v59 = vld [vmem:[%s2617_s2 + $0xb8] sm:$0xff]  ;;  %v1228_v60 = vld [vmem:[%s2616_s1 + $0x240] sm:$0xff] }
 0x18d   :  { %v433_v29 = vmul.f32 %v425_v26, %v2223_v47  ;;  %v865_v20 = vld [vmem:[%s2617_s2 + $0xb0] sm:$0xff]  ;;  %v1229_v26 = vld [vmem:[%s2616_s1 + $0x248] sm:$0xff] }
 0x18e   :  { %v432_v30 = vmul.f32 %v424_v25, %v2223_v47  ;;  %1910 = vmatprep.subr.bf16.mxu1 %v1909_v28  ;;  %v1230_v25 = vld [vmem:[%s2616_s1 + $0x250] sm:$0xff] }
 0x18f   :  { %1912 = vmatpush3.bf16.msra.mxu1 %v1909_v28  ;;  %v1231_v28 = vld [vmem:[%s2616_s1 + $0x258] sm:$0xff] }
 0x190   :  { %v1913_v31 = vpack.c.bf16 %v433_v29, %v432_v30  ;;  %v1232_v29 = vld [vmem:[%s2616_s1 + $0x260] sm:$0xff]  ;;  %v1233_v30 = vld [vmem:[%s2616_s1 + $0x268] sm:$0xff] }
 0x192   :  { %1914 = vmatprep.subr.bf16.mxu1 %v1913_v31 }
 0x193   :  { %1916 = vmatpush3.bf16.msra.mxu1 %v1913_v31  ;;  %v1234_v31 = vld [vmem:[%s2616_s1 + $0x270] sm:$0xff] }
 0x194   :  { %1934 = vmatprep.subr.bf16.mxu1 %v2004_v4 }
 0x196   :  { %1751 = vmatmul.mubr.msk.f32.vlgmr.msra.gmra.mrb[0].mxu1 %vm64_vm0, %v435_v22  ;;  %v1235_v22 = vld [vmem:[%s2616_s1 + $0x278] sm:$0xff] }
 0x197   :  { %1753 = vmatprep.mubr.msk.f32.mxu1 %vm64_vm0, %v436_v27  ;;  %1936 = vmatpush3.bf16.msra.mxu1 %v2004_v4  ;;  %v440_v4 = vld [vmem:[%s2616_s1 + $0xf0] sm:$0xff]  ;;  %v779_v27 = vpop.permute.xlu1 %778 }
 0x198   :  { %1938 = vmatprep.subr.bf16.mxu1 %v2009_v6 }
 0x19a   :  { %1754 = vmatmul.mubr.msk.f32.gmra.mrb[2].mxu1 %vm64_vm0, %v437_v32  ;;  %v774_v32 = vpop.permute.xlu0 %773 }
 0x19b   :  { %1756 = vmatprep.mubr.msk.f32.mxu1 %vm64_vm0, %v438_v33  ;;  %1940 = vmatpush3.bf16.msra.mxu1 %v2009_v6  ;;  %v442_v6 = vld [vmem:[%s2616_s1 + $0x100] sm:$0xff]  ;;  %v789_v33 = vpop.permute.xlu1 %788 }
 0x19c   :  { %1942 = vmatprep.subr.bf16.mxu1 %v2024_v10 }
 0x19e   :  { %1757 = vmatmul.mubr.msk.f32.gmra.mrb[4].mxu1 %vm64_vm0, %v439_v34  ;;  %v784_v34 = vpop.permute.xlu0 %783 }
 0x19f   :  { %1759 = vmatprep.mubr.msk.f32.mxu1 %vm64_vm0, %v440_v4  ;;  %1944 = vmatpush3.bf16.msra.mxu1 %v2024_v10  ;;  %v444_v10 = vld [vmem:[%s2616_s1 + $0x110] sm:$0xff]  ;;  %v799_v4 = vpop.permute.xlu1 %798 }
 0x1a0   :  { %1946 = vmatprep.subr.bf16.mxu1 %v2034_v13 }
 0x1a2   :  { %1760 = vmatmul.mubr.msk.f32.gmra.mrb[6].mxu1 %vm64_vm0, %v441_v35  ;;  %v794_v35 = vpop.permute.xlu0 %793 }
 0x1a3   :  { %1762 = vmatprep.mubr.msk.f32.mxu1 %vm64_vm0, %v442_v6  ;;  %1948 = vmatpush3.bf16.msra.mxu1 %v2034_v13  ;;  %v447_v13 = vld [vmem:[%s2616_s1 + $0x128] sm:$0xff]  ;;  %v809_v6 = vpop.permute.xlu1 %808 }
 0x1a6   :  { %1763 = vmatmul.mubr.msk.f32.gmra.mrb[8].mxu1 %vm64_vm0, %v443_v36  ;;  %v804_v36 = vpop.permute.xlu0 %803 }
 0x1a7   :  { %1765 = vmatprep.mubr.msk.f32.mxu1 %vm64_vm0, %v444_v10 }
 0x1aa   :  { %1766 = vmatmul.mubr.msk.f32.gmra.mrb[10].mxu1 %vm64_vm0, %v445_v37 }
 0x1ab   :  { %1768 = vmatprep.mubr.msk.f32.mxu1 %vm64_vm0, %v446_v38 }
 0x1ae   :  { %1769 = vmatmul.mubr.msk.f32.gmra.mrb[12].mxu1 %vm64_vm0, %v447_v13 }
 0x1af   :  { %1771 = vmatprep.mubr.msk.f32.mxu1 %vm64_vm0, %v448_v39 }
 0x1b2   :  { %1772 = vmatmul.mubr.msk.f32.gmra.mrb[14].mxu1 %vm64_vm0, %v449_v40 }
 0x1b3   :  { %1774 = vmatprep.mubr.msk.f32.mxu1 %vm64_vm0, %v450_v41 }
 0x1b6   :  { %1775 = vmatmul.mubr.msk.f32.gmra.mrb[16].mxu1 %vm64_vm0, %v451_v42 }
 0x1b7   :  { %1777 = vmatprep.mubr.msk.f32.mxu1 %vm64_vm0, %v452_v43 }
 0x1ba   :  { %1778 = vmatmul.mubr.msk.f32.gmra.mrb[18].mxu1 %vm64_vm0, %v453_v44 }
 0x1bb   :  { %1780 = vmatprep.mubr.msk.f32.mxu1 %vm64_vm0, %v454_v45 }
 0x1be   :  { %1781 = vmatmul.mubr.msk.f32.gmra.mrb[20].mxu1 %vm64_vm0, %v455_v46 }
 0x1bf   :  { %1783 = vmatprep.mubr.msk.f32.mxu1 %vm64_vm0, %v456_v48 }
 0x1c2   :  { %1784 = vmatmul.mubr.msk.f32.gmra.mrb[22].mxu1 %vm64_vm0, %v457_v49 }
 0x1c3   :  { %1854 = vmatprep.mubr.msk.f32.mxu1 %vm64_vm0, %v1228_v60 }
 0x1c6   :  { %1855 = vmatmul.mubr.msk.f32.vlgmr.msra.gmra.mrb[24].mxu1 %vm64_vm0, %v1229_v26 }
 0x1c7   :  { %1857 = vmatprep.mubr.msk.f32.mxu1 %vm64_vm0, %v1230_v25 }
 0x1ca   :  { %1858 = vmatmul.mubr.msk.f32.gmra.mrb[26].mxu1 %vm64_vm0, %v1231_v28 }
 0x1cb   :  { %1860 = vmatprep.mubr.msk.f32.mxu1 %vm64_vm0, %v1232_v29 }
 0x1ce   :  { %1861 = vmatmul.mubr.msk.f32.gmra.mrb[28].mxu1 %vm64_vm0, %v1233_v30 }
 0x1cf   :  { %1863 = vmatprep.mubr.msk.f32.mxu1 %vm64_vm0, %v1234_v31 }
 0x1d2   :  { %1864 = vmatmul.mubr.msk.f32.gmra.mrb[30].mxu1 %vm64_vm0, %v1235_v22 }
 0x269   :  { %v1752_v50 = vpop.f32.mrb[0].mxu1 }
 0x26a   :  { %725 = vrot.lane.b32.xlu1 %v1752_v50, %s1972_s8  ;;  %v604_v51 = vpop.f32.mrb[1].mxu1 }
 0x26b   :  { %723 = vrot.lane.b32.xlu0 %v604_v51, %s1972_s8 }
 0x26d   :  { %v1755_v52 = vpop.f32.mrb[2].mxu1 }
 0x26e   :  { %729 = vrot.lane.b32.xlu1 %v1755_v52, %s1972_s8  ;;  %v614_v53 = vpop.f32.mrb[3].mxu1 }
 0x26f   :  { %727 = vrot.lane.b32.xlu0 %v614_v53, %s1972_s8 }
 0x271   :  { %v1758_v54 = vpop.f32.mrb[4].mxu1 }
 0x272   :  { %733 = vrot.lane.b32.xlu1 %v1758_v54, %s1972_s8  ;;  %v624_v61 = vpop.f32.mrb[5].mxu1 }
 0x273   :  { %731 = vrot.lane.b32.xlu0 %v624_v61, %s1972_s8 }
 0x275   :  { %v1761_v62 = vpop.f32.mrb[6].mxu1 }
 0x276   :  { %737 = vrot.lane.b32.xlu1 %v1761_v62, %s1972_s8  ;;  %v634_v55 = vpop.f32.mrb[7].mxu1 }
 0x277   :  { %735 = vrot.lane.b32.xlu0 %v634_v55, %s1972_s8 }
 0x279   :  { %v2347_v63 = vpop.f32.mrb[8].mxu1 }
 0x27a   :  { %v2349_v0 = vpop.f32.mrb[9].mxu1 }
 0x27d   :  { %v2351_v56 = vpop.f32.mrb[10].mxu1 }
 0x27e   :  { %v2353_v1 = vpop.f32.mrb[11].mxu1 }
 0x281   :  { %v2355_v2 = vpop.f32.mrb[12].mxu1 }
 0x282   :  { %v2357_v3 = vpop.f32.mrb[13].mxu1 }
 0x285   :  { %v2359_v5 = vpop.f32.mrb[14].mxu1 }
 0x286   :  { %v2361_v7 = vpop.f32.mrb[15].mxu1 }
 0x289   :  { %v1776_v8 = vpop.f32.mrb[16].mxu1 }
 0x28a   :  { %749 = vrot.lane.b32.xlu1 %v1776_v8, %s1973_s9  ;;  %v684_v9 = vpop.f32.mrb[17].mxu1 }
 0x28b   :  { %747 = vrot.lane.b32.xlu0 %v684_v9, %s1973_s9 }
 0x28d   :  { %v1779_v11 = vpop.f32.mrb[18].mxu1 }
 0x28e   :  { %753 = vrot.lane.b32.xlu1 %v1779_v11, %s1973_s9  ;;  %v694_v57 = vpop.f32.mrb[19].mxu1 }
 0x28f   :  { %751 = vrot.lane.b32.xlu0 %v694_v57, %s1973_s9 }
 0x291   :  { %v1782_v12 = vpop.f32.mrb[20].mxu1 }
 0x292   :  { %757 = vrot.lane.b32.xlu1 %v1782_v12, %s1973_s9  ;;  %v704_v14 = vpop.f32.mrb[21].mxu1 }
 0x293   :  { %755 = vrot.lane.b32.xlu0 %v704_v14, %s1973_s9 }
 0x295   :  { %v1785_v58 = vpop.f32.mrb[22].mxu1 }
 0x296   :  { %761 = vrot.lane.b32.xlu1 %v1785_v58, %s1973_s9  ;;  %v714_v16 = vpop.f32.mrb[23].mxu1 }
 0x297   :  { %759 = vrot.lane.b32.xlu0 %v714_v16, %s1973_s9 }
 0x29a   :  { %1179 = vperm.xlu1 %1970, %v860_v17  }
 0x29b   :  { %1174 = vperm.xlu0 %1969, %v859_v18  }
 0x29e   :  { %1199 = vperm.xlu1 %1970, %v864_v19  }
 0x29f   :  { %1194 = vperm.xlu0 %1969, %v863_v21  }
 0x2a2   :  { %1189 = vperm.xlu1 %1970, %v862_v23  }
 0x2a3   :  { %1184 = vperm.xlu0 %1969, %v861_v24  }
 0x2a6   :  { %1209 = vperm.xlu1 %1970, %v866_v59  }
 0x2a7   :  { %1204 = vperm.xlu0 %1969, %v865_v20  }
 0x2dc   :  { %v726_v10 = vpop.permute.xlu1 %725 }
 0x2dd   :  { %v724_v37 = vpop.permute.xlu0 %723  ;;  %v740_v43 = vadd.f32 %v2347_v63, %v726_v10  ;;  %v839_v10 = vld [vmem:[%s2616_s1 + $0x1a0] sm:$0xff] }
 0x2de   :  { %v739_v44 = vadd.f32 %v724_v37, %v2349_v0  ;;  %v840_v37 = vld [vmem:[%s2616_s1 + $0x1a8] sm:$0xff] }
 0x2e0   :  { %v730_v38 = vpop.permute.xlu1 %729 }
 0x2e1   :  { %v728_v13 = vpop.permute.xlu0 %727  ;;  %v742_v50 = vadd.f32 %v2351_v56, %v730_v38  ;;  %v841_v38 = vld [vmem:[%s2616_s1 + $0x1b0] sm:$0xff] }
 0x2e2   :  { %v741_v52 = vadd.f32 %v728_v13, %v2353_v1  ;;  %v842_v13 = vld [vmem:[%s2616_s1 + $0x1b8] sm:$0xff] }
 0x2e4   :  { %v734_v39 = vpop.permute.xlu1 %733 }
 0x2e5   :  { %v732_v40 = vpop.permute.xlu0 %731  ;;  %v744_v63 = vadd.f32 %v2355_v2, %v734_v39  ;;  %v843_v39 = vld [vmem:[%s2616_s1 + $0x1c0] sm:$0xff] }
 0x2e6   :  { %v743_v57 = vadd.f32 %v732_v40, %v2357_v3  ;;  %v844_v40 = vld [vmem:[%s2616_s1 + $0x1c8] sm:$0xff] }
 0x2e8   :  { %v738_v41 = vpop.permute.xlu1 %737 }
 0x2e9   :  { %v736_v42 = vpop.permute.xlu0 %735  ;;  %v746_v19 = vadd.f32 %v2359_v5, %v738_v41  ;;  %v845_v41 = vld [vmem:[%s2616_s1 + $0x1d0] sm:$0xff] }
 0x2ea   :  { %v745_v23 = vadd.f32 %v736_v42, %v2361_v7  ;;  %v846_v42 = vld [vmem:[%s2616_s1 + $0x1d8] sm:$0xff] }
 0x2fc   :  { %v750_v45 = vpop.permute.xlu1 %749 }
 0x2fd   :  { %v764_v46 = vadd.f32 %v750_v45, %v740_v43  ;;  %v748_v48 = vpop.permute.xlu0 %747  ;;  %v847_v43 = vld [vmem:[%s2616_s1 + $0x1e0] sm:$0xff]  ;;  %v849_v45 = vld [vmem:[%s2616_s1 + $0x1f0] sm:$0xff] }
 0x2fe   :  { %v763_v49 = vadd.f32 %v748_v48, %v739_v44  ;;  %v848_v44 = vld [vmem:[%s2616_s1 + $0x1e8] sm:$0xff]  ;;  %v851_v48 = vld [vmem:[%s2616_s1 + $0x200] sm:$0xff] }
 0x2ff   :  { %v812_v51 = vadd.f32 %v779_v27, %v764_v46  ;;  %v850_v46 = vld [vmem:[%s2616_s1 + $0x1f8] sm:$0xff] }
 0x300   :  { %v811_v53 = vadd.f32 %v774_v32, %v763_v49  ;;  %v754_v54 = vpop.permute.xlu1 %753  ;;  %v852_v49 = vld [vmem:[%s2616_s1 + $0x208] sm:$0xff] }
 0x301   :  { %v820_v61 = vmax.f32 %v812_v51, 0.0  ;;  %v766_v62 = vadd.f32 %v754_v54, %v742_v50  ;;  %v752_v55 = vpop.permute.xlu0 %751  ;;  %v853_v50 = vld [vmem:[%s2616_s1 + $0x210] sm:$0xff]  ;;  %v854_v51 = vld [vmem:[%s2616_s1 + $0x218] sm:$0xff] }
 0x302   :  { %v819_v8 = vmax.f32 %v811_v53, 0.0  ;;  %v765_v9 = vadd.f32 %v752_v55, %v741_v52  ;;  %v855_v52 = vld [vmem:[%s2616_s1 + $0x220] sm:$0xff]  ;;  %v856_v53 = vld [vmem:[%s2616_s1 + $0x228] sm:$0xff]  ;;  %v857_v54 = vld [vmem:[%s2616_s1 + $0x230] sm:$0xff] }
 0x303   :  { %v828_v0 = vmul.f32 %v820_v61, %v2223_v47  ;;  %v814_v11 = vadd.f32 %v789_v33, %v766_v62  ;;  %v858_v61 = vld [vmem:[%s2616_s1 + $0x238] sm:$0xff] }
 0x304   :  { %v827_v12 = vmul.f32 %v819_v8, %v2223_v47  ;;  %v813_v56 = vadd.f32 %v784_v34, %v765_v9  ;;  %v758_v14 = vpop.permute.xlu1 %757 }
 0x305   :  { %v822_v58 = vmax.f32 %v814_v11, 0.0  ;;  %v768_v1 = vadd.f32 %v758_v14, %v744_v63  ;;  %v756_v15 = vpop.permute.xlu0 %755 }
 0x306   :  { %v821_v16 = vmax.f32 %v813_v56, 0.0  ;;  %v767_v17 = vadd.f32 %v756_v15, %v743_v57  ;;  %v1917_v18 = vpack.c.bf16 %v828_v0, %v827_v12 }
 0x307   :  { %v830_v21 = vmul.f32 %v822_v58, %v2223_v47  ;;  %v816_v2 = vadd.f32 %v799_v4, %v768_v1  ;;  %v2547_v1 = vpop.f32.mrb[24].mxu1 }
 0x308   :  { %v829_v24 = vmul.f32 %v821_v16, %v2223_v47  ;;  %v815_v3 = vadd.f32 %v794_v35, %v767_v17  ;;  %v762_v59 = vpop.permute.xlu1 %761  ;;  %1918 = vmatprep.subr.bf16.mxu0 %v1917_v18  ;;  %v836_v35 = vld [vmem:[%s2616_s1 + $0x188] sm:$0xff]  ;;  %v2549_v15 = vpop.f32.mrb[25].mxu1 }
 0x309   :  { %v824_v20 = vmax.f32 %v816_v2, 0.0  ;;  %v770_v60 = vadd.f32 %v762_v59, %v746_v19  ;;  %1920 = vmatpush3.bf16.msra.mxu0 %v1917_v18  ;;  %v760_v26 = vpop.permute.xlu0 %759  ;;  %v2551_v16 = vpop.f32.mrb[26].mxu1 }
 0x30a   :  { %v823_v25 = vmax.f32 %v815_v3, 0.0  ;;  %v769_v28 = vadd.f32 %v760_v26, %v745_v23  ;;  %v1921_v29 = vpack.c.bf16 %v830_v21, %v829_v24  ;;  %v2553_v18 = vpop.f32.mrb[27].mxu1 }
 0x30b   :  { %v832_v30 = vmul.f32 %v824_v20, %v2223_v47  ;;  %v818_v5 = vadd.f32 %v809_v6, %v770_v60  ;;  %v837_v6 = vld [vmem:[%s2616_s1 + $0x190] sm:$0xff]  ;;  %v2555_v21 = vpop.f32.mrb[28].mxu1 }
 0x30c   :  { %v831_v31 = vmul.f32 %v823_v25, %v2223_v47  ;;  %v817_v22 = vadd.f32 %v804_v36, %v769_v28  ;;  %1922 = vmatprep.subr.bf16.mxu0 %v1921_v29  ;;  %v838_v36 = vld [vmem:[%s2616_s1 + $0x198] sm:$0xff]  ;;  %v2557_v2 = vpop.f32.mrb[29].mxu1 }
 0x30d   :  { %v826_v7 = vmax.f32 %v818_v5, 0.0  ;;  %1924 = vmatpush3.bf16.msra.mxu0 %v1921_v29  ;;  %v2563_v3 = vpop.f32.mrb[30].mxu1 }
 0x30e   :  { %v825_v27 = vmax.f32 %v817_v22, 0.0  ;;  %v1925_v32 = vpack.c.bf16 %v832_v30, %v831_v31  ;;  %v2565_v59 = vpop.f32.mrb[31].mxu1  ;;  %v1236_v31 = vld [vmem:[%s2616_s1 + $0x280] sm:$0xff] }
 0x30f   :  { %v834_v33 = vmul.f32 %v826_v7, %v2223_v47  ;;  %1882 = vmatprep.mubr.msk.f32.mxu1 %vm64_vm0, %v1236_v31 }
 0x310   :  { %v833_v34 = vmul.f32 %v825_v27, %v2223_v47  ;;  %1926 = vmatprep.subr.bf16.mxu0 %v1925_v32 }
 0x311   :  { %1928 = vmatpush3.bf16.msra.mxu0 %v1925_v32 }
 0x312   :  { %v1929_v4 = vpack.c.bf16 %v834_v33, %v833_v34 }
 0x314   :  { %1930 = vmatprep.subr.bf16.mxu0 %v1929_v4 }
 0x315   :  { %1932 = vmatpush3.bf16.msra.mxu0 %v1929_v4 }
 0x318   :  { %1803 = vmatmul.mubr.msk.f32.vlgmr.msra.gmra.mrb[24].mxu0 %vm64_vm0, %v836_v35 }
 0x319   :  { %1805 = vmatprep.mubr.msk.f32.mxu0 %vm64_vm0, %v837_v6  ;;  %v1180_v22 = vpop.permute.xlu1 %1179 }
 0x31a   :  { %v1175_v7 = vpop.permute.xlu0 %1174 }
 0x31c   :  { %1806 = vmatmul.mubr.msk.f32.gmra.mrb[26].mxu0 %vm64_vm0, %v838_v36 }
 0x31d   :  { %1808 = vmatprep.mubr.msk.f32.mxu0 %vm64_vm0, %v839_v10  ;;  %v1200_v27 = vpop.permute.xlu1 %1199 }
 0x31e   :  { %v1195_v32 = vpop.permute.xlu0 %1194 }
 0x320   :  { %1809 = vmatmul.mubr.msk.f32.gmra.mrb[28].mxu0 %vm64_vm0, %v840_v37 }
 0x321   :  { %1811 = vmatprep.mubr.msk.f32.mxu0 %vm64_vm0, %v841_v38  ;;  %v1190_v33 = vpop.permute.xlu1 %1189 }
 0x322   :  { %v1185_v34 = vpop.permute.xlu0 %1184 }
 0x324   :  { %1812 = vmatmul.mubr.msk.f32.gmra.mrb[30].mxu0 %vm64_vm0, %v842_v13 }
 0x325   :  { %1814 = vmatprep.mubr.msk.f32.mxu0 %vm64_vm0, %v843_v39  ;;  %v1210_v4 = vpop.permute.xlu1 %1209 }
 0x326   :  { %v1205_v35 = vpop.permute.xlu0 %1204 }
 0x328   :  { %1815 = vmatmul.mubr.msk.f32.gmra.mrb[32].mxu0 %vm64_vm0, %v844_v40 }
 0x329   :  { %1817 = vmatprep.mubr.msk.f32.mxu0 %vm64_vm0, %v845_v41 }
 0x32c   :  { %1818 = vmatmul.mubr.msk.f32.gmra.mrb[34].mxu0 %vm64_vm0, %v846_v42 }
 0x32d   :  { %1820 = vmatprep.mubr.msk.f32.mxu0 %vm64_vm0, %v847_v43 }
 0x330   :  { %1821 = vmatmul.mubr.msk.f32.gmra.mrb[36].mxu0 %vm64_vm0, %v848_v44 }
 0x331   :  { %1823 = vmatprep.mubr.msk.f32.mxu0 %vm64_vm0, %v849_v45 }
 0x334   :  { %1824 = vmatmul.mubr.msk.f32.gmra.mrb[38].mxu0 %vm64_vm0, %v850_v46 }
 0x335   :  { %1826 = vmatprep.mubr.msk.f32.mxu0 %vm64_vm0, %v851_v48 }
 0x338   :  { %1827 = vmatmul.mubr.msk.f32.gmra.mrb[40].mxu0 %vm64_vm0, %v852_v49 }
 0x339   :  { %1829 = vmatprep.mubr.msk.f32.mxu0 %vm64_vm0, %v853_v50 }
 0x33c   :  { %1830 = vmatmul.mubr.msk.f32.gmra.mrb[42].mxu0 %vm64_vm0, %v854_v51 }
 0x33d   :  { %1832 = vmatprep.mubr.msk.f32.mxu0 %vm64_vm0, %v855_v52 }
 0x340   :  { %1833 = vmatmul.mubr.msk.f32.gmra.mrb[44].mxu0 %vm64_vm0, %v856_v53 }
 0x341   :  { %1835 = vmatprep.mubr.msk.f32.mxu0 %vm64_vm0, %v857_v54 }
 0x344   :  { %1836 = vmatmul.mubr.msk.f32.gmra.mrb[46].mxu0 %vm64_vm0, %v858_v61 }
 0x3eb   :  { %v1804_v62 = vpop.f32.mrb[24].mxu0 }
 0x3ec   :  { %1126 = vrot.lane.b32.xlu1 %v1804_v62, %s1972_s8  ;;  %v1005_v55 = vpop.f32.mrb[25].mxu0 }
 0x3ed   :  { %1124 = vrot.lane.b32.xlu0 %v1005_v55, %s1972_s8 }
 0x3ef   :  { %v1807_v8 = vpop.f32.mrb[26].mxu0 }
 0x3f0   :  { %1130 = vrot.lane.b32.xlu1 %v1807_v8, %s1972_s8  ;;  %v1015_v9 = vpop.f32.mrb[27].mxu0 }
 0x3f1   :  { %1128 = vrot.lane.b32.xlu0 %v1015_v9, %s1972_s8 }
 0x3f3   :  { %v1810_v63 = vpop.f32.mrb[28].mxu0 }
 0x3f4   :  { %1134 = vrot.lane.b32.xlu1 %v1810_v63, %s1972_s8  ;;  %v1025_v0 = vpop.f32.mrb[29].mxu0 }
 0x3f5   :  { %1132 = vrot.lane.b32.xlu0 %v1025_v0, %s1972_s8 }
 0x3f7   :  { %v1813_v11 = vpop.f32.mrb[30].mxu0 }
 0x3f8   :  { %1138 = vrot.lane.b32.xlu1 %v1813_v11, %s1972_s8  ;;  %v1035_v57 = vpop.f32.mrb[31].mxu0 }
 0x3f9   :  { %1136 = vrot.lane.b32.xlu0 %v1035_v57, %s1972_s8 }
 0x3fb   :  { %v1816_v12 = vpop.f32.mrb[32].mxu0 }
 0x3fc   :  { %v1045_v56 = vpop.f32.mrb[33].mxu0 }
 0x3ff   :  { %v1819_v14 = vpop.f32.mrb[34].mxu0 }
 0x400   :  { %v1055_v58 = vpop.f32.mrb[35].mxu0 }
 0x403   :  { %v1822_v17 = vpop.f32.mrb[36].mxu0 }
 0x404   :  { %v1065_v19 = vpop.f32.mrb[37].mxu0 }
 0x407   :  { %v2559_v23 = vpop.f32.mrb[38].mxu0 }
 0x408   :  { %v2561_v24 = vpop.f32.mrb[39].mxu0 }
 0x40b   :  { %v1828_v20 = vpop.f32.mrb[40].mxu0 }
 0x40c   :  { %1150 = vrot.lane.b32.xlu1 %v1828_v20, %s1973_s9  ;;  %v1085_v60 = vpop.f32.mrb[41].mxu0 }
 0x40d   :  { %1148 = vrot.lane.b32.xlu0 %v1085_v60, %s1973_s9 }
 0x40f   :  { %v1831_v26 = vpop.f32.mrb[42].mxu0 }
 0x410   :  { %1154 = vrot.lane.b32.xlu1 %v1831_v26, %s1973_s9  ;;  %v1095_v25 = vpop.f32.mrb[43].mxu0 }
 0x411   :  { %1152 = vrot.lane.b32.xlu0 %v1095_v25, %s1973_s9 }
 0x413   :  { %v1834_v28 = vpop.f32.mrb[44].mxu0 }
 0x414   :  { %1158 = vrot.lane.b32.xlu1 %v1834_v28, %s1973_s9  ;;  %v1105_v29 = vpop.f32.mrb[45].mxu0 }
 0x415   :  { %1156 = vrot.lane.b32.xlu0 %v1105_v29, %s1973_s9 }
 0x417   :  { %v1837_v30 = vpop.f32.mrb[46].mxu0 }
 0x418   :  { %1162 = vrot.lane.b32.xlu1 %v1837_v30, %s1973_s9  ;;  %v1115_v5 = vpop.f32.mrb[47].mxu0 }
 0x419   :  { %1160 = vrot.lane.b32.xlu0 %v1115_v5, %s1973_s9 }
 0x45e   :  { %v1127_v6 = vpop.permute.xlu1 %1126 }
 0x45f   :  { %v1125_v36 = vpop.permute.xlu0 %1124  ;;  %v1141_v41 = vadd.f32 %v1816_v12, %v1127_v6 }
 0x460   :  { %v1140_v42 = vadd.f32 %v1125_v36, %v1045_v56 }
 0x462   :  { %v1131_v10 = vpop.permute.xlu1 %1130 }
 0x463   :  { %v1129_v37 = vpop.permute.xlu0 %1128  ;;  %v1143_v48 = vadd.f32 %v1819_v14, %v1131_v10 }
 0x464   :  { %v1142_v50 = vadd.f32 %v1129_v37, %v1055_v58 }
 0x466   :  { %v1135_v38 = vpop.permute.xlu1 %1134 }
 0x467   :  { %v1133_v13 = vpop.permute.xlu0 %1132  ;;  %v1145_v8 = vadd.f32 %v1822_v17, %v1135_v38 }
 0x468   :  { %v1144_v11 = vadd.f32 %v1133_v13, %v1065_v19 }
 0x46a   :  { %v1139_v39 = vpop.permute.xlu1 %1138 }
 0x46b   :  { %v1137_v40 = vpop.permute.xlu0 %1136  ;;  %v1147_v17 = vadd.f32 %v2559_v23, %v1139_v39 }
 0x46c   :  { %v1146_v30 = vadd.f32 %v1137_v40, %v2561_v24 }
 0x47e   :  { %v1151_v43 = vpop.permute.xlu1 %1150 }
 0x47f   :  { %v1165_v44 = vadd.f32 %v1151_v43, %v1141_v41  ;;  %v1149_v45 = vpop.permute.xlu0 %1148 }
 0x480   :  { %v1164_v46 = vadd.f32 %v1149_v45, %v1140_v42 }
 0x481   :  { %v1213_v49 = vadd.f32 %v1180_v22, %v1165_v44 }
 0x482   :  { %v1212_v51 = vadd.f32 %v1175_v7, %v1164_v46  ;;  %v1155_v52 = vpop.permute.xlu1 %1154 }
 0x483   :  { %v1221_v53 = vmul.f32 %v1213_v49, %v2223_v47  ;;  %v1167_v54 = vadd.f32 %v1155_v52, %v1143_v48  ;;  %v1153_v61 = vpop.permute.xlu0 %1152 }
 0x484   :  { %v1220_v62 = vmul.f32 %v1212_v51, %v2223_v47  ;;  %v1166_v55 = vadd.f32 %v1153_v61, %v1142_v50 }
 0x485   :  { %v1368_v9 = vmul.f32 %v2547_v1, %v1221_v53  ;;  %v1215_v63 = vadd.f32 %v1190_v33, %v1167_v54  ;;  %v1384_v0 = vmul.f32 %v2555_v21, %v1221_v53 }
 0x486   :  { %v1367_v57 = vmul.f32 %v2549_v15, %v1220_v62  ;;  %v1214_v12 = vadd.f32 %v1185_v34, %v1166_v55  ;;  %v1383_v56 = vmul.f32 %v2557_v2, %v1220_v62  ;;  %v1159_v14 = vpop.permute.xlu1 %1158 }
 0x487   :  { %v1169_v58 = vadd.f32 %v1159_v14, %v1145_v8  ;;  %v1157_v20 = vpop.permute.xlu0 %1156  ;;  %v1223_v60 = vmul.f32 %v1215_v63, %v2223_v47 }
 0x488   :  { %v1168_v26 = vadd.f32 %v1157_v20, %v1144_v11  ;;  %v1222_v25 = vmul.f32 %v1214_v12, %v2223_v47 }
 0x489   :  { %v1217_v28 = vadd.f32 %v1200_v27, %v1169_v58  ;;  %v1370_v29 = vmul.f32 %v2551_v16, %v1223_v60  ;;  %v1386_v19 = vmul.f32 %v2563_v3, %v1223_v60 }
 0x48a   :  { %v1216_v5 = vadd.f32 %v1195_v32, %v1168_v26  ;;  %v1369_v31 = vmul.f32 %v2553_v18, %v1222_v25  ;;  %v1385_v22 = vmul.f32 %v2565_v59, %v1222_v25  ;;  %v1163_v7 = vpop.permute.xlu1 %1162 }
 0x48b   :  { %v1225_v33 = vmul.f32 %v1217_v28, %v2223_v47  ;;  %v1171_v34 = vadd.f32 %v1163_v7, %v1147_v17  ;;  %v1161_v6 = vpop.permute.xlu0 %1160 }
 0x48c   :  { %v1224_v36 = vmul.f32 %v1216_v5, %v2223_v47  ;;  %v1170_v23 = vadd.f32 %v1161_v6, %v1146_v30 }
 0x48d   :  { %v1372_v27 = vmul.f32 %v2555_v21, %v1225_v33  ;;  %v1380_v10 = vmul.f32 %v2547_v1, %v1225_v33  ;;  %v1219_v37 = vadd.f32 %v1210_v4, %v1171_v34 }
 0x48e   :  { %v1371_v24 = vmul.f32 %v2557_v2, %v1224_v36  ;;  %v1379_v32 = vmul.f32 %v2549_v15, %v1224_v36  ;;  %v1218_v38 = vadd.f32 %v1205_v35, %v1170_v23 }
 0x48f   :  { %v1227_v13 = vmul.f32 %v1219_v37, %v2223_v47  ;;  %v1376_v39 = vsub.f32 %v1368_v9, %v1372_v27  ;;  %v1388_v40 = vadd.f32 %v1384_v0, %v1380_v10 }
 0x490   :  { %v1226_v41 = vmul.f32 %v1218_v38, %v2223_v47  ;;  %v1375_v42 = vsub.f32 %v1367_v57, %v1371_v24  ;;  %v1387_v43 = vadd.f32 %v1383_v56, %v1379_v32 }
 0x491   :  { %v1374_v44 = vmul.f32 %v2563_v3, %v1227_v13  ;;  %v1382_v21 = vmul.f32 %v2551_v16, %v1227_v13  ;;  %v1237_v16 = vld [vmem:[%s2616_s1 + $0x288] sm:$0xff] }
 0x492   :  { %v1373_v1 = vmul.f32 %v2565_v59, %v1226_v41  ;;  %v1381_v4 = vmul.f32 %v2553_v18, %v1226_v41  ;;  %v1949_v2 = vpack.c.bf16 %v1376_v39, %v1375_v42  ;;  %v1957_v45 = vpack.c.bf16 %v1388_v40, %v1387_v43 }
 0x493   :  { %v1378_v15 = vsub.f32 %v1370_v29, %v1374_v44  ;;  %v1390_v35 = vadd.f32 %v1386_v19, %v1382_v21 }
 0x494   :  { %1950 = vmatprep.subr.bf16.mxu1 %v1949_v2  ;;  %v1377_v46 = vsub.f32 %v1369_v31, %v1373_v1  ;;  %v1389_v48 = vadd.f32 %v1385_v22, %v1381_v4 }
 0x495   :  { %1952 = vmatpush3.bf16.msra.mxu1 %v1949_v2 }
 0x496   :  { %v1953_v49 = vpack.c.bf16 %v1378_v15, %v1377_v46  ;;  %v1961_v47 = vpack.c.bf16 %v1390_v35, %v1389_v48 }
 0x498   :  { %1954 = vmatprep.subr.bf16.mxu1 %v1953_v49 }
 0x499   :  { %1956 = vmatpush3.bf16.msra.mxu1 %v1953_v49 }
 0x49a   :  { %1958 = vmatprep.subr.bf16.mxu1 %v1957_v45 }
 0x49d   :  { %1960 = vmatpush3.bf16.msra.mxu1 %v1957_v45 }
 0x49e   :  { %1962 = vmatprep.subr.bf16.mxu1 %v1961_v47 }
 0x4a1   :  { %1964 = vmatpush3.bf16.msra.mxu1 %v1961_v47 }
 0x4a4   :  { %1883 = vmatmul.mubr.msk.f32.vlgmr.msra.gmra.mrb[32].mxu1 %vm64_vm0, %v1237_v16 }
 0x577   :  { %v1884_v18 = vpop.f32.mrb[32].mxu1 }
 0x578   :  { %1473 = vst [vmem:[%s2618_s3 + $0x8] sm:$0xff] %v1884_v18  ;;  %v1463_v3 = vpop.f32.mrb[33].mxu1 }
 0x579   :  { %1472 = vst [vmem:[%s2618_s3] sm:$0xff] %v1463_v3 }

</bundles_post_ra>
